<compile_context>
chip_gen: v5e
topology: v5e:2x2
jax: 0.10.0
libtpu: 0.0.40
codegen_flags: <defaults>
</compile_context>

<pallas_src>
import jax
import jax.numpy as jnp
from jax.experimental import pallas as pl
from jax.experimental.pallas import tpu as pltpu

LANE = 128
SUB = 8


def _round_up(n, m):
    return ((n + m - 1) // m) * m


def autoencoder_kernel(x_ref, w1_ref, b1_ref, w2_ref, b2_ref,
                       w3_ref, b3_ref, w4_ref, b4_ref,
                       recon_ref, z_ref):
    """One batch tile: z = enc(x); recon = dec(z).  f32 accumulation throughout."""
    cdt = w1_ref.dtype                       # MXU input dtype (f32 or bf16)
    x = x_ref[...]
    if x.dtype != cdt:
        x = x.astype(cdt)                    # in-kernel cast (VPU, free)

    # --- encoder ---
    h = jnp.dot(x, w1_ref[...], preferred_element_type=jnp.float32) + b1_ref[...]
    h = jnp.maximum(h, 0.0)                  # ReLU in f32
    z = jnp.dot(h.astype(cdt), w2_ref[...],
                preferred_element_type=jnp.float32) + b2_ref[...]
    z_ref[...] = z.astype(z_ref.dtype)

    # --- decoder ---
    h = jnp.dot(z.astype(cdt), w3_ref[...],
                preferred_element_type=jnp.float32) + b3_ref[...]
    h = jnp.maximum(h, 0.0)
    y = jnp.dot(h.astype(cdt), w4_ref[...],
                preferred_element_type=jnp.float32) + b4_ref[...]
    recon_ref[...] = y.astype(recon_ref.dtype)


def _tpu_vmem_capacity_bytes():
    try:
        return int(pltpu.get_tpu_info().vmem_capacity_bytes)
    except Exception:
        return 64 * 1024 * 1024   # conservative default: assume v7x-sized VMEM


def _resident_spec(shape):
    """Weights/biases: constant index map + single buffer (never re-fetched)."""
    try:
        return pl.BlockSpec(shape, lambda i: (0, 0), pipeline_mode=pl.Buffered(1))
    except TypeError:             # older jax without pipeline_mode on BlockSpec
        return pl.BlockSpec(shape, lambda i: (0, 0))


def autoencoder_forward(x, w1, b1, w2, b2, w3, b3, w4, b4, *,
                        compute_dtype=None, out_dtype=None, block_batch=None):
    """Pallas forward pass of the Autoencoder.

    x:  (B, input_dim)
    w1: (input_dim, hidden),  b1: (hidden,)
    w2: (hidden, latent),     b2: (latent,)
    w3: (latent, hidden),     b3: (hidden,)
    w4: (hidden, input_dim),  b4: (input_dim,)
    returns (recon: (B, input_dim), z: (B, latent))
    """
    if out_dtype is None:
        out_dtype = x.dtype
    if compute_dtype is None:
        compute_dtype = x.dtype

    B, input_dim = x.shape
    hidden_dim = w1.shape[1]
    latent_dim = w2.shape[1]
    assert w1.shape == (input_dim, hidden_dim)
    assert w2.shape == (hidden_dim, latent_dim)
    assert w3.shape == (latent_dim, hidden_dim)
    assert w4.shape == (hidden_dim, input_dim)

    # Activation-facing dims stay (nearly) unpadded: only bump odd sizes to a
    # sublane multiple.  The weight-internal hidden dim gets 128 (lane) padding
    # because it never touches HBM activations.
    in_p = _round_up(input_dim, SUB)
    lat_p = _round_up(latent_dim, SUB)
    hid_p = _round_up(hidden_dim, LANE)

    # ---- generation-aware VMEM budget / tile caps ---------------------------
    vmem_cap = _tpu_vmem_capacity_bytes()
    if vmem_cap >= (100 << 20):        # v5e / v6e: 128 MiB VMEM per core
        budget, limit_cap, bb_cap, multi_core = 96 << 20, 100 << 20, 1024, False
    else:                              # v7x: 64 MiB per TensorCore, 2 TCs/chip
        budget, limit_cap, bb_cap, multi_core = 44 << 20, 56 << 20, 512, True

    def weight_bytes(isz):
        return ((in_p * hid_p + hid_p * lat_p + lat_p * hid_p + hid_p * in_p) * isz
                + (2 * hid_p + lat_p + in_p) * 4)            # biases stay f32

    # Weight-dominated case: shrinking block_batch cannot reduce resident
    # weights, so force bf16 residency (f32 accumulation is kept in-kernel).
    # TODO(synk): for truly huge projections add a hidden-dim grid axis with an
    # f32 VMEM accumulator instead of relying on bf16 residency alone.
    if weight_bytes(jnp.dtype(compute_dtype).itemsize) > budget:
        compute_dtype = jnp.bfloat16

    w_isz = jnp.dtype(compute_dtype).itemsize
    x_isz = jnp.dtype(x.dtype).itemsize
    o_isz = jnp.dtype(out_dtype).itemsize
    row_align = 16 if min(x_isz, o_isz) == 2 else 8          # sublane packing

    if block_batch is None:
        block_batch = min(_round_up(B, row_align), bb_cap)
    block_batch = max(_round_up(block_batch, row_align), row_align)
    if multi_core and B >= 2 * row_align:
        # Guarantee >= 2 grid steps so both v7x TensorCores get work.
        block_batch = min(block_batch,
                          max(row_align, _round_up(pl.cdiv(B, 2), row_align)))

    def vmem_estimate(bb):
        weights = weight_bytes(w_isz)                         # single-buffered
        io = bb * (in_p * x_isz + in_p * o_isz + lat_p * o_isz)
        inter = bb * (2 * hid_p + lat_p) * 4                  # f32 activations
        return weights + 2 * io + inter                       # 2x: activation dbl-buf

    while vmem_estimate(block_batch) > budget and block_batch > row_align:
        block_batch = max(_round_up(block_batch // 2, row_align), row_align)

    grid = (pl.cdiv(B, block_batch),)     # ragged last tile handled by Pallas

    def pad2(a, r, c, dt):
        if a.dtype != dt:
            a = a.astype(dt)
        pr, pc = r - a.shape[0], c - a.shape[1]
        if pr or pc:
            a = jnp.pad(a, ((0, pr), (0, pc)))
        return a

    # Zero-padding is exact: padded x cols hit zero weight rows, padded hidden /
    # latent cols get zero weight cols + zero bias (ReLU(0) = 0).
    w1p = pad2(w1, in_p, hid_p, compute_dtype)
    w2p = pad2(w2, hid_p, lat_p, compute_dtype)
    w3p = pad2(w3, lat_p, hid_p, compute_dtype)
    w4p = pad2(w4, hid_p, in_p, compute_dtype)
    b1p = pad2(b1.reshape(1, -1), 1, hid_p, jnp.float32)
    b2p = pad2(b2.reshape(1, -1), 1, lat_p, jnp.float32)
    b3p = pad2(b3.reshape(1, -1), 1, hid_p, jnp.float32)
    b4p = pad2(b4.reshape(1, -1), 1, in_p, jnp.float32)

    # x: never cast, never batch-padded; lane-pad only if input_dim was odd.
    xp = x if in_p == input_dim else jnp.pad(x, ((0, 0), (0, in_p - input_dim)))

    vmem_limit = int(min(max(vmem_estimate(block_batch) + (8 << 20), 32 << 20),
                         limit_cap))

    recon_p, z_p = pl.pallas_call(
        autoencoder_kernel,
        out_shape=(jax.ShapeDtypeStruct((B, in_p), out_dtype),
                   jax.ShapeDtypeStruct((B, lat_p), out_dtype)),
        grid_spec=pltpu.PrefetchScalarGridSpec(
            num_scalar_prefetch=0,
            grid=grid,
            in_specs=[
                # batch-tiled activations (double-buffered by the pipeline)
                pl.BlockSpec((block_batch, in_p), lambda i: (i, 0)),
                # resident weights / biases: constant index map, single buffer
                _resident_spec((in_p, hid_p)),
                _resident_spec((1, hid_p)),
                _resident_spec((hid_p, lat_p)),
                _resident_spec((1, lat_p)),
                _resident_spec((lat_p, hid_p)),
                _resident_spec((1, hid_p)),
                _resident_spec((hid_p, in_p)),
                _resident_spec((1, in_p)),
            ],
            out_specs=[
                pl.BlockSpec((block_batch, in_p), lambda i: (i, 0)),
                pl.BlockSpec((block_batch, lat_p), lambda i: (i, 0)),
            ],
        ),
        compiler_params=pltpu.CompilerParams(
            dimension_semantics=("parallel",),   # batch axis -> megacore on v7x
            vmem_limit_bytes=vmem_limit,
        ),
    )(xp, w1p, b1p, w2p, b2p, w3p, b3p, w4p, b4p)

    recon = recon_p if in_p == input_dim else recon_p[:, :input_dim]
    z = z_p if lat_p == latent_dim else z_p[:, :latent_dim]
    return recon, z


def init_params(key, input_dim, hidden_dim, latent_dim, dtype=jnp.float32):
    """PyTorch-style uniform init; weights stored as (in_features, out_features)."""
    ks = jax.random.split(key, 8)

    def lin(kw, kb, fan_in, fan_out):
        bound = 1.0 / (fan_in ** 0.5)
        w = jax.random.uniform(kw, (fan_in, fan_out), dtype, -bound, bound)
        b = jax.random.uniform(kb, (fan_out,), dtype, -bound, bound)
        return w, b

    w1, b1 = lin(ks[0], ks[1], input_dim, hidden_dim)
    w2, b2 = lin(ks[2], ks[3], hidden_dim, latent_dim)
    w3, b3 = lin(ks[4], ks[5], latent_dim, hidden_dim)
    w4, b4 = lin(ks[6], ks[7], hidden_dim, input_dim)
    return w1, b1, w2, b2, w3, b3, w4, b4


if __name__ == "__main__":
    # Small shapes consistent with the module (default hidden=128, latent=32).
    batch = 8
    input_dim = 48
    hidden_dim = 128
    latent_dim = 32

    key = jax.random.PRNGKey(0)
    kx, kp = jax.random.split(key)
    x = jax.random.normal(kx, (batch, input_dim), dtype=jnp.float32)
    params = init_params(kp, input_dim, hidden_dim, latent_dim)
    w1, b1, w2, b2, w3, b3, w4, b4 = params

    def reference(xv):
        zr = jnp.maximum(xv @ w1 + b1, 0.0) @ w2 + b2
        rr = jnp.maximum(zr @ w3 + b3, 0.0) @ w4 + b4
        return rr, zr

    # f32 path (matches the PyTorch module exactly).
    recon, z = jax.block_until_ready(autoencoder_forward(x, *params))
    recon_ref, z_ref = reference(x)
    assert recon.shape == (batch, input_dim) and z.shape == (batch, latent_dim)
    assert jnp.allclose(z, z_ref, atol=1e-5, rtol=1e-5)
    assert jnp.allclose(recon, recon_ref, atol=1e-5, rtol=1e-5)

    # Ragged batch (B not a multiple of the tile) exercises the cdiv grid +
    # masked last tile instead of HBM batch padding.
    xr = jax.random.normal(jax.random.PRNGKey(1), (13, input_dim), jnp.float32)
    recon_r, z_r = jax.block_until_ready(
        autoencoder_forward(xr, *params, block_batch=8))
    rr_ref, zr_ref = reference(xr)
    assert recon_r.shape == (13, input_dim) and z_r.shape == (13, latent_dim)
    assert jnp.allclose(z_r, zr_ref, atol=1e-5, rtol=1e-5)
    assert jnp.allclose(recon_r, rr_ref, atol=1e-5, rtol=1e-5)

    # bf16 MXU path with f32 accumulation (perf mode) — loose tolerance expected.
    recon_bf, z_bf = jax.block_until_ready(
        autoencoder_forward(x, *params, compute_dtype=jnp.bfloat16))
    assert recon_bf.shape == (batch, input_dim) and z_bf.shape == (batch, latent_dim)
    assert jnp.allclose(z_bf, z_ref, atol=2e-1, rtol=1e-1)
    assert jnp.allclose(recon_bf, recon_ref, atol=2e-1, rtol=1e-1)

    print("KERNEL_OK")
</pallas_src>

<mosaic_0001>
module attributes {stable_mosaic.version = 11 : i64} {
  func.func @autoencoder_kernel(%arg0: i32, %arg1: memref<8x48xf32, #tpu.memory_space<vmem>>, %arg2: memref<48x128xf32, #tpu.memory_space<vmem>>, %arg3: memref<1x128xf32, #tpu.memory_space<vmem>>, %arg4: memref<128x32xf32, #tpu.memory_space<vmem>>, %arg5: memref<1x32xf32, #tpu.memory_space<vmem>>, %arg6: memref<32x128xf32, #tpu.memory_space<vmem>>, %arg7: memref<1x128xf32, #tpu.memory_space<vmem>>, %arg8: memref<128x48xf32, #tpu.memory_space<vmem>>, %arg9: memref<1x48xf32, #tpu.memory_space<vmem>>, %arg10: memref<8x48xf32, #tpu.memory_space<vmem>>, %arg11: memref<8x32xf32, #tpu.memory_space<vmem>>) attributes {dimension_semantics = [#tpu.dimension_semantics<parallel>], iteration_bounds = array<i64: 1>, scalar_prefetch = 0 : i64, scratch_operands = 0 : i64, tpu.core_type = #tpu.core_type<tc>, window_params = [{transform_indices = @transform_0, window_bounds = array<i64: 8, 48>}, {pipeline_mode = #tpu.pipeline_mode<synchronous>, transform_indices = @transform_1, window_bounds = array<i64: 48, 128>}, {pipeline_mode = #tpu.pipeline_mode<synchronous>, transform_indices = @transform_2, window_bounds = array<i64: 1, 128>}, {pipeline_mode = #tpu.pipeline_mode<synchronous>, transform_indices = @transform_3, window_bounds = array<i64: 128, 32>}, {pipeline_mode = #tpu.pipeline_mode<synchronous>, transform_indices = @transform_4, window_bounds = array<i64: 1, 32>}, {pipeline_mode = #tpu.pipeline_mode<synchronous>, transform_indices = @transform_5, window_bounds = array<i64: 32, 128>}, {pipeline_mode = #tpu.pipeline_mode<synchronous>, transform_indices = @transform_6, window_bounds = array<i64: 1, 128>}, {pipeline_mode = #tpu.pipeline_mode<synchronous>, transform_indices = @transform_7, window_bounds = array<i64: 128, 48>}, {pipeline_mode = #tpu.pipeline_mode<synchronous>, transform_indices = @transform_8, window_bounds = array<i64: 1, 48>}, {transform_indices = @transform_9, window_bounds = array<i64: 8, 48>}, {transform_indices = @transform_10, window_bounds = array<i64: 8, 32>}]} {
    %c0 = arith.constant 0 : index
    %c0_0 = arith.constant 0 : index
    %0 = vector.load %arg1[%c0, %c0_0] : memref<8x48xf32, #tpu.memory_space<vmem>>, vector<8x48xf32>
    %c0_1 = arith.constant 0 : index
    %c0_2 = arith.constant 0 : index
    %1 = vector.load %arg2[%c0_1, %c0_2] : memref<48x128xf32, #tpu.memory_space<vmem>>, vector<48x128xf32>
    %cst = arith.constant dense<0.000000e+00> : vector<8x128xf32>
    %2 = tpu.matmul %0, %1, %cst {dimension_numbers = #tpu.dot_dimension_numbers<[1], [0], [0], [1], [0, 0, 1, 1], [], []>} : vector<8x48xf32>, vector<48x128xf32>, vector<8x128xf32> -> vector<8x128xf32>
    %c0_3 = arith.constant 0 : index
    %c0_4 = arith.constant 0 : index
    %3 = vector.load %arg3[%c0_3, %c0_4] : memref<1x128xf32, #tpu.memory_space<vmem>>, vector<1x128xf32>
    %4 = vector.broadcast %3 : vector<1x128xf32> to vector<8x128xf32>
    %5 = arith.addf %2, %4 : vector<8x128xf32>
    %cst_5 = arith.constant 0.000000e+00 : f32
    %6 = vector.broadcast %cst_5 : f32 to vector<8x128xf32>
    %7 = arith.maximumf %5, %6 : vector<8x128xf32>
    %c0_6 = arith.constant 0 : index
    %c0_7 = arith.constant 0 : index
    %8 = vector.load %arg4[%c0_6, %c0_7] : memref<128x32xf32, #tpu.memory_space<vmem>>, vector<128x32xf32>
    %cst_8 = arith.constant dense<0.000000e+00> : vector<8x32xf32>
    %9 = tpu.matmul %7, %8, %cst_8 {dimension_numbers = #tpu.dot_dimension_numbers<[1], [0], [0], [1], [0, 0, 1, 1], [], []>} : vector<8x128xf32>, vector<128x32xf32>, vector<8x32xf32> -> vector<8x32xf32>
    %c0_9 = arith.constant 0 : index
    %c0_10 = arith.constant 0 : index
    %10 = vector.load %arg5[%c0_9, %c0_10] : memref<1x32xf32, #tpu.memory_space<vmem>>, vector<1x32xf32>
    %11 = vector.broadcast %10 : vector<1x32xf32> to vector<8x32xf32>
    %12 = arith.addf %9, %11 : vector<8x32xf32>
    %c0_11 = arith.constant 0 : index
    %c0_12 = arith.constant 0 : index
    %13 = vector.load %arg11[%c0_11, %c0_12] : memref<8x32xf32, #tpu.memory_space<vmem>>, vector<8x32xf32>
    tpu.vector_store %arg11[%c0_11, %c0_12], %12 {strides = array<i32>} : memref<8x32xf32, #tpu.memory_space<vmem>>, vector<8x32xf32>,
    %c0_13 = arith.constant 0 : index
    %c0_14 = arith.constant 0 : index
    %14 = vector.load %arg6[%c0_13, %c0_14] : memref<32x128xf32, #tpu.memory_space<vmem>>, vector<32x128xf32>
    %cst_15 = arith.constant dense<0.000000e+00> : vector<8x128xf32>
    %15 = tpu.matmul %12, %14, %cst_15 {dimension_numbers = #tpu.dot_dimension_numbers<[1], [0], [0], [1], [0, 0, 1, 1], [], []>} : vector<8x32xf32>, vector<32x128xf32>, vector<8x128xf32> -> vector<8x128xf32>
    %c0_16 = arith.constant 0 : index
    %c0_17 = arith.constant 0 : index
    %16 = vector.load %arg7[%c0_16, %c0_17] : memref<1x128xf32, #tpu.memory_space<vmem>>, vector<1x128xf32>
    %17 = vector.broadcast %16 : vector<1x128xf32> to vector<8x128xf32>
    %18 = arith.addf %15, %17 : vector<8x128xf32>
    %cst_18 = arith.constant 0.000000e+00 : f32
    %19 = vector.broadcast %cst_18 : f32 to vector<8x128xf32>
    %20 = arith.maximumf %18, %19 : vector<8x128xf32>
    %c0_19 = arith.constant 0 : index
    %c0_20 = arith.constant 0 : index
    %21 = vector.load %arg8[%c0_19, %c0_20] : memref<128x48xf32, #tpu.memory_space<vmem>>, vector<128x48xf32>
    %cst_21 = arith.constant dense<0.000000e+00> : vector<8x48xf32>
    %22 = tpu.matmul %20, %21, %cst_21 {dimension_numbers = #tpu.dot_dimension_numbers<[1], [0], [0], [1], [0, 0, 1, 1], [], []>} : vector<8x128xf32>, vector<128x48xf32>, vector<8x48xf32> -> vector<8x48xf32>
    %c0_22 = arith.constant 0 : index
    %c0_23 = arith.constant 0 : index
    %23 = vector.load %arg9[%c0_22, %c0_23] : memref<1x48xf32, #tpu.memory_space<vmem>>, vector<1x48xf32>
    %24 = vector.broadcast %23 : vector<1x48xf32> to vector<8x48xf32>
    %25 = arith.addf %22, %24 : vector<8x48xf32>
    %c0_24 = arith.constant 0 : index
    %c0_25 = arith.constant 0 : index
    %26 = vector.load %arg10[%c0_24, %c0_25] : memref<8x48xf32, #tpu.memory_space<vmem>>, vector<8x48xf32>
    tpu.vector_store %arg10[%c0_24, %c0_25], %25 {strides = array<i32>} : memref<8x48xf32, #tpu.memory_space<vmem>>, vector<8x48xf32>,
    return
  }
  func.func @transform_0(%arg0: i32) -> (i32, i32) {
    %c0_i32 = arith.constant 0 : i32
    %c0_i32_0 = arith.constant 0 : i32
    return %arg0, %c0_i32 : i32, i32
  }
  func.func @transform_1(%arg0: i32) -> (i32, i32) {
    %c0_i32 = arith.constant 0 : i32
    %c0_i32_0 = arith.constant 0 : i32
    %c0_i32_1 = arith.constant 0 : i32
    return %c0_i32, %c0_i32_0 : i32, i32
  }
  func.func @transform_2(%arg0: i32) -> (i32, i32) {
    %c0_i32 = arith.constant 0 : i32
    %c0_i32_0 = arith.constant 0 : i32
    %c0_i32_1 = arith.constant 0 : i32
    return %c0_i32, %c0_i32_0 : i32, i32
  }
  func.func @transform_3(%arg0: i32) -> (i32, i32) {
    %c0_i32 = arith.constant 0 : i32
    %c0_i32_0 = arith.constant 0 : i32
    %c0_i32_1 = arith.constant 0 : i32
    return %c0_i32, %c0_i32_0 : i32, i32
  }
  func.func @transform_4(%arg0: i32) -> (i32, i32) {
    %c0_i32 = arith.constant 0 : i32
    %c0_i32_0 = arith.constant 0 : i32
    %c0_i32_1 = arith.constant 0 : i32
    return %c0_i32, %c0_i32_0 : i32, i32
  }
  func.func @transform_5(%arg0: i32) -> (i32, i32) {
    %c0_i32 = arith.constant 0 : i32
    %c0_i32_0 = arith.constant 0 : i32
    %c0_i32_1 = arith.constant 0 : i32
    return %c0_i32, %c0_i32_0 : i32, i32
  }
  func.func @transform_6(%arg0: i32) -> (i32, i32) {
    %c0_i32 = arith.constant 0 : i32
    %c0_i32_0 = arith.constant 0 : i32
    %c0_i32_1 = arith.constant 0 : i32
    return %c0_i32, %c0_i32_0 : i32, i32
  }
  func.func @transform_7(%arg0: i32) -> (i32, i32) {
    %c0_i32 = arith.constant 0 : i32
    %c0_i32_0 = arith.constant 0 : i32
    %c0_i32_1 = arith.constant 0 : i32
    return %c0_i32, %c0_i32_0 : i32, i32
  }
  func.func @transform_8(%arg0: i32) -> (i32, i32) {
    %c0_i32 = arith.constant 0 : i32
    %c0_i32_0 = arith.constant 0 : i32
    %c0_i32_1 = arith.constant 0 : i32
    return %c0_i32, %c0_i32_0 : i32, i32
  }
  func.func @transform_9(%arg0: i32) -> (i32, i32) {
    %c0_i32 = arith.constant 0 : i32
    %c0_i32_0 = arith.constant 0 : i32
    return %arg0, %c0_i32 : i32, i32
  }
  func.func @transform_10(%arg0: i32) -> (i32, i32) {
    %c0_i32 = arith.constant 0 : i32
    %c0_i32_0 = arith.constant 0 : i32
    return %arg0, %c0_i32 : i32, i32
  }
}

</mosaic_0001>

<bundles_post_ra>
// kernel: tpu_custom_call.1
= control target key start
LH: loop header
LB: loop body
LE: loop exit
PB: predicated region body
PF: predicated region fallthrough
CT: control target
= control target key end

     0   :  { %16 = vsyncpa [#allocation3], 0  ;;  %s485_s0 = inlined_call_operand.vmem [shape: f32[8,48], index: 0, kind: input, shape index: {}]   ;;  %s486_s1 = inlined_call_operand.vmem [shape: f32[48,128], index: 1, kind: input, shape index: {}]   ;;  %s487_s2 = inlined_call_operand.vmem [shape: f32[1,128], index: 2, kind: input, shape index: {}]   ;;  %s488_s3 = inlined_call_operand.vmem [shape: f32[128,32], index: 3, kind: input, shape index: {}]   ;;  %s489_s4 = inlined_call_operand.vmem [shape: f32[1,32], index: 4, kind: input, shape index: {}]   ;;  %s490_s5 = inlined_call_operand.vmem [shape: f32[32,128], index: 5, kind: input, shape index: {}]   ;;  %s491_s6 = inlined_call_operand.vmem [shape: f32[1,128], index: 6, kind: input, shape index: {}]   ;;  %s492_s7 = inlined_call_operand.vmem [shape: f32[128,48], index: 7, kind: input, shape index: {}]   ;;  %s493_s8 = inlined_call_operand.vmem [shape: f32[1,48], index: 8, kind: input, shape index: {}]   ;;  %s494_s9 = inlined_call_operand.hbm [shape: f32[8,48], index: 9, kind: output, shape index: {0}]   ;;  %s495_s10 = inlined_call_operand.hbm [shape: f32[8,32], index: 10, kind: output, shape index: {1}]  }
   0x1   :  { %v42_v0 = vld [vmem:[%s486_s1 + $0x28] sm:$0xff]  ;;  %v41_v1 = vld [vmem:[%s486_s1 + $0x20] sm:$0xff]  ;;  %v40_v2 = vld [vmem:[%s486_s1 + $0x18] sm:$0xff] }
   0x2   :  { %61 = vmatpush.msra.mxu0 %v42_v0  ;;  %v87_v3 = vld [vmem:[%s488_s3 + $0x78] sm:$0xff]  ;;  %v86_v4 = vld [vmem:[%s488_s3 + $0x70] sm:$0xff]  ;;  %v85_v6 = vld [vmem:[%s488_s3 + $0x68] sm:$0xff] }
   0x3   :  { %92 = vmatpush.msra.mxu1 %v87_v3  ;;  %v39_v5 = vld [vmem:[%s486_s1 + $0x10] sm:$0xff]  ;;  %v38_v7 = vld [vmem:[%s486_s1 + $0x8] sm:$0xff]  ;;  %v84_v8 = vld [vmem:[%s488_s3 + $0x60] sm:$0xff] }
   0x4   :  { %62 = vmatpush.msra.mxu0 %v41_v1  ;;  %v37_v9 = vld [vmem:[%s486_s1] sm:$0xff]  ;;  %v83_v10 = vld [vmem:[%s488_s3 + $0x58] sm:$0xff] }
   0x5   :  { %93 = vmatpush.msra.mxu1 %v86_v4 }
   0x6   :  { %63 = vmatpush.msra.mxu0 %v40_v2 }
   0x7   :  { %94 = vmatpush.msra.mxu1 %v85_v6 }
   0x8   :  { %64 = vmatpush.msra.mxu0 %v39_v5 }
   0x9   :  { %17 = vsyncpa [#allocation5], 0  ;;  %v36_v11 = vld [vmem:[%s485_s0] sm:$0xff]  ;;  %vm47_vm0 = vcmask 392192   ;;  %95 = vmatpush.msra.mxu1 %v84_v8  ;;  %v82_v12 = vld [vmem:[%s488_s3 + $0x50] sm:$0xff]  ;;  %vm112_vm1 = vcmask 261120  }
   0xa   :  { %65 = vmatpush.msra.mxu0 %v38_v7  ;;  %v81_v13 = vld [vmem:[%s488_s3 + $0x48] sm:$0xff]  ;;  %v80_v14 = vld [vmem:[%s488_s3 + $0x40] sm:$0xff]  ;;  %v79_v15 = vld [vmem:[%s488_s3 + $0x38] sm:$0xff]  ;;  %s279_s12 = smov [#allocation4]   ;;  %s205_s16 = sshll.u32 %s495_s10, 4  ;;  %s206_s16 = int_to_ptr.hbm [resolvable:$true] %s205_s16 }
   0xb   :  { %96 = vmatpush.msra.mxu1 %v83_v10  ;;  %v78_v16 = vld [vmem:[%s488_s3 + $0x30] sm:$0xff]  ;;  %v77_v17 = vld [vmem:[%s488_s3 + $0x28] sm:$0xff]  ;;  %v76_v18 = vld [vmem:[%s488_s3 + $0x20] sm:$0xff]  ;;  %s203_s13 = sshll.u32 %s279_s12, 4  ;;  %s280_s18 = smov [#allocation2]   ;;  %s204_s13 = int_to_ptr.vmem [resolvable:$true] %s203_s13 }
   0xc   :  { %66 = vmatpush.msra.mxu0 %v37_v9  ;;  %v75_v19 = vld [vmem:[%s488_s3 + $0x18] sm:$0xff]  ;;  %v74_v20 = vld [vmem:[%s488_s3 + $0x10] sm:$0xff]  ;;  %v73_v21 = vld [vmem:[%s488_s3 + $0x8] sm:$0xff]  ;;  %s192_s1 = sshll.u32 %s280_s18, 4  ;;  %s194_s20 = sshll.u32 %s494_s9, 4  ;;  %s193_s1 = int_to_ptr.vmem [resolvable:$true] %s192_s1  ;;  %s195_s20 = int_to_ptr.hbm [resolvable:$true] %s194_s20 }
   0xd   :  { %219 = vmatmul.msk.f32.vlgmr.msra.gmra.mxu0 %vm47_vm0, %v36_v11  ;;  %97 = vmatpush.msra.mxu1 %v82_v12  ;;  %v72_v22 = vld [vmem:[%s488_s3] sm:$0xff]  ;;  %v117_v23 = vld [vmem:[%s490_s5 + $0x18] sm:$0xff]  ;;  %v116_v24 = vld [vmem:[%s490_s5 + $0x10] sm:$0xff] }
   0xe   :  { %137 = vmatpush.msra.mxu2 %v117_v23  ;;  %v223_v25 = vld [vmem:[%s487_s2] ss:$0 sm:$0xff]  ;;  %v115_v29 = vld [vmem:[%s490_s5 + $0x8] sm:$0xff]  ;;  %v161_v31 = vld [vmem:[%s492_s7 + $0x78] sm:$0xff] }
   0xf   :  { %98 = vmatpush.msra.mxu1 %v81_v13  ;;  %v114_v30 = vld [vmem:[%s490_s5] sm:$0xff]  ;;  %v160_v32 = vld [vmem:[%s492_s7 + $0x70] sm:$0xff]  ;;  %166 = vmatpush.msra.mxu3 %v161_v31  ;;  %v159_v33 = vld [vmem:[%s492_s7 + $0x68] sm:$0xff] }
  0x10   :  { %138 = vmatpush.msra.mxu2 %v116_v24  ;;  %v158_v34 = vld [vmem:[%s492_s7 + $0x60] sm:$0xff]  ;;  %v157_v35 = vld [vmem:[%s492_s7 + $0x58] sm:$0xff]  ;;  %v156_v36 = vld [vmem:[%s492_s7 + $0x50] sm:$0xff] }
  0x11   :  { %99 = vmatpush.msra.mxu1 %v80_v14  ;;  %167 = vmatpush.msra.mxu3 %v160_v32  ;;  %v155_v37 = vld [vmem:[%s492_s7 + $0x48] sm:$0xff]  ;;  %v154_v38 = vld [vmem:[%s492_s7 + $0x40] sm:$0xff]  ;;  %v153_v39 = vld [vmem:[%s492_s7 + $0x38] sm:$0xff] }
  0x12   :  { %139 = vmatpush.msra.mxu2 %v115_v29  ;;  %v152_v40 = vld [vmem:[%s492_s7 + $0x30] sm:$0xff]  ;;  %v151_v41 = vld [vmem:[%s492_s7 + $0x28] sm:$0xff]  ;;  %v150_v42 = vld [vmem:[%s492_s7 + $0x20] sm:$0xff] }
  0x13   :  { %100 = vmatpush.msra.mxu1 %v79_v15  ;;  %168 = vmatpush.msra.mxu3 %v159_v33  ;;  %v149_v43 = vld [vmem:[%s492_s7 + $0x18] sm:$0xff]  ;;  %v224_v44 = vld [vmem:[%s489_s4] ss:$0 sm:$0xff]  ;;  %v148_v47 = vld [vmem:[%s492_s7 + $0x10] sm:$0xff] }
  0x14   :  { %140 = vmatpush.msra.mxu2 %v114_v30  ;;  %v147_v48 = vld [vmem:[%s492_s7 + $0x8] sm:$0xff]  ;;  %v146_v49 = vld [vmem:[%s492_s7] sm:$0xff] }
  0x15   :  { %101 = vmatpush.msra.mxu1 %v78_v16  ;;  %169 = vmatpush.msra.mxu3 %v158_v34  ;;  %v225_v50 = vld [vmem:[%s491_s6] ss:$0 sm:$0xff] }
  0x16   :  { %v226_v54 = vld [vmem:[%s493_s8] ss:$0 sm:$0xff] }
  0x17   :  { %102 = vmatpush.msra.mxu1 %v77_v17  ;;  %170 = vmatpush.msra.mxu3 %v157_v35 }
  0x19   :  { %103 = vmatpush.msra.mxu1 %v76_v18  ;;  %171 = vmatpush.msra.mxu3 %v156_v36 }
  0x1b   :  { %104 = vmatpush.msra.mxu1 %v75_v19  ;;  %172 = vmatpush.msra.mxu3 %v155_v37 }
  0x1d   :  { %105 = vmatpush.msra.mxu1 %v74_v20  ;;  %173 = vmatpush.msra.mxu3 %v154_v38 }
  0x1f   :  { %106 = vmatpush.msra.mxu1 %v73_v21  ;;  %174 = vmatpush.msra.mxu3 %v153_v39 }
  0x21   :  { %107 = vmatpush.msra.mxu1 %v72_v22  ;;  %175 = vmatpush.msra.mxu3 %v152_v40 }
  0x23   :  { %176 = vmatpush.msra.mxu3 %v151_v41 }
  0x25   :  { %177 = vmatpush.msra.mxu3 %v150_v42 }
  0x27   :  { %178 = vmatpush.msra.mxu3 %v149_v43 }
  0x29   :  { %179 = vmatpush.msra.mxu3 %v148_v47 }
  0x2b   :  { %180 = vmatpush.msra.mxu3 %v147_v48 }
  0x2d   :  { %181 = vmatpush.msra.mxu3 %v146_v49 }
  0x8a   :  { %v68_v26 = vpop.f32.mrf.mxu0 }
  0x8b   :  { %v69_v27 = vadd.f32 %v223_v25, %v68_v26 }
  0x8d   :  { %v71_v28 = vmax.f32 %v69_v27, 0.0 }
  0x8f   :  { %108 = vmatmul.f32.vlgmr.msra.gmra.mxu1 %v71_v28 }
 0x10c   :  { %v109_v45 = vpop.f32.mrf.mxu1 }
 0x10d   :  { %v110_v46 = vadd.f32 %v224_v44, %v109_v45 }
 0x10f   :  { %113 = vst.msk [vmem:[#allocation4] sm:$0xff] %vm112_vm1, %v110_v46  ;;  %220 = vmatmul.msk.f32.vlgmr.msra.gmra.mxu2 %vm112_vm1, %v110_v46 }
 0x110   :  { %208 = dma.vmem_to_hbm [thread:$0]  %s204_s13, 128, %s206_s16, [#allocation5]  }
 0x192   :  { %v142_v51 = vpop.f32.mrf.mxu2 }
 0x193   :  { %v143_v52 = vadd.f32 %v225_v50, %v142_v51 }
 0x195   :  { %v145_v53 = vmax.f32 %v143_v52, 0.0 }
 0x197   :  { %182 = vmatmul.f32.vlgmr.msra.gmra.mxu3 %v145_v53 }
 0x21a   :  { %v183_v55 = vpop.f32.mrf.mxu3 }
 0x21b   :  { %v184_v56 = vadd.f32 %v226_v54, %v183_v55 }
 0x21d   :  { %186 = vst.msk [vmem:[#allocation2] sm:$0xff] %vm47_vm0, %v184_v56 }
 0x21e   :  { %197 = dma.vmem_to_hbm [thread:$0]  %s193_s1, 128, %s195_s20, [#allocation3]  }
 0x21f   :  { %275 = dma.done.wait [#allocation3], 128  }
 0x220   :  { %276 = vsyncadd [#allocation3], 4294967168 }
 0x221   :  { %277 = dma.done.wait [#allocation5], 128  }
 0x222   :  { %278 = vsyncadd [#allocation5], 4294967168 }
 0x223   :  { %217 = vsyncpa [#allocation3], 1 }
 0x224   :  { %218 = vsyncpa [#allocation5], 1 }

</bundles_post_ra>
